<compile_context>
chip_gen: v6e
topology: v6e:2x2x1
jax: 0.10.0
libtpu: 0.0.40
codegen_flags: <defaults>
</compile_context>

<pallas_src>
import jax
import jax.numpy as jnp
from jax.experimental import pallas as pl
from jax.experimental.pallas import tpu as pltpu


def _supcon_rows_kernel(y_pred_ref, y_true_ref, loss_ref):
    """Per-row SupContrastive loss for one (block_rows, N) tile."""
    yp = y_pred_ref[...].astype(jnp.float32)   # (TB, N)
    yt = y_true_ref[...].astype(jnp.float32)   # (TB, N)

    # Single exp per element; exp(-y_pred) is recovered as an exact reciprocal.
    e = jnp.exp(yp)                            # (TB, N)   EUP
    recip_e = 1.0 / e                          # (TB, N)   exp(-yp), exact-ish

    # sum_neg = ((1 - y_true) * exp(y_pred)).sum(1, keepdims=True)   -> (TB, 1)
    sum_neg = jnp.sum((1.0 - yt) * e, axis=1, keepdims=True)
    # sum_pos = y_true * exp(-y_pred)                                 -> (TB, N)
    sum_pos = yt * recip_e
    # num_pos = y_true.sum(1)                                         -> (TB, 1)
    num_pos = jnp.sum(yt, axis=1, keepdims=True)
    # loss = log(1 + sum_neg * sum_pos).sum(1) / num_pos              -> (TB, 1)
    per_row = jnp.sum(jnp.log1p(sum_neg * sum_pos), axis=1, keepdims=True) / num_pos

    loss_ref[...] = per_row.astype(loss_ref.dtype)


def _sublane_multiple(*dtypes):
    """Sublane packing multiple: 8 for 4B dtypes, 16 for 2B, 32 for 1B."""
    m = 8
    for dt in dtypes:
        m = max(m, 8 * (4 // max(1, jnp.dtype(dt).itemsize)))
    return m


def _choose_block_rows(batch, n, bytes_per_row, sublane_mult):
    """Pick a batch tile: ~4 MiB of combined input per tile (x2 pipeline
    buffers => ~8 MiB VMEM), rounded to the sublane packing multiple."""
    target_bytes = 4 * 1024 * 1024
    tb = target_bytes // max(1, bytes_per_row)
    tb = max(sublane_mult, (tb // sublane_mult) * sublane_mult)
    b_pad = ((batch + sublane_mult - 1) // sublane_mult) * sublane_mult
    return int(min(tb, b_pad, 4096))


def sup_contrastive(y_pred, y_true, reduction="mean", block_rows=None):
    """Pallas TPU implementation of SupContrastive.forward.

    y_pred, y_true: (B, N) arrays (any float/int dtype; computed in f32).
    Returns a scalar for reduction='mean', else a (B,) per-example f32 vector.
    """
    B, N = y_pred.shape

    m = _sublane_multiple(y_pred.dtype, y_true.dtype)
    bytes_per_row = N * (jnp.dtype(y_pred.dtype).itemsize
                         + jnp.dtype(y_true.dtype).itemsize)
    if block_rows is None:
        tb = _choose_block_rows(B, N, bytes_per_row, m)
    else:
        tb = max(m, ((int(block_rows) + m - 1) // m) * m)

    num_tiles = -(-B // tb)
    b_pad = num_tiles * tb
    if b_pad != B:
        # Padded rows produce NaN (num_pos == 0) but are sliced off below.
        pad = b_pad - B
        y_pred = jnp.pad(y_pred, ((0, pad), (0, 0)))
        y_true = jnp.pad(y_true, ((0, pad), (0, 0)))

    out = pl.pallas_call(
        _supcon_rows_kernel,
        out_shape=jax.ShapeDtypeStruct((b_pad, 1), jnp.float32),
        grid=(num_tiles,),
        in_specs=[
            pl.BlockSpec((tb, N), lambda i: (i, 0)),
            pl.BlockSpec((tb, N), lambda i: (i, 0)),
        ],
        out_specs=pl.BlockSpec((tb, 1), lambda i: (i, 0)),
        compiler_params=pltpu.CompilerParams(
            dimension_semantics=("parallel",),      # row tiles are independent
            vmem_limit_bytes=32 * 1024 * 1024,      # safe on v5e/v6e/v7x
        ),
    )(y_pred, y_true)

    per_row = out[:B, 0]
    if reduction == "mean":
        return jnp.mean(per_row)
    return per_row


def _reference(y_pred, y_true, reduction="mean"):
    """Pure-JAX reference mirroring the PyTorch module exactly."""
    y_pred = y_pred.astype(jnp.float32)
    y_true = y_true.astype(jnp.float32)
    sum_neg = jnp.sum((1 - y_true) * jnp.exp(y_pred), axis=1, keepdims=True)
    sum_pos = y_true * jnp.exp(-y_pred)
    num_pos = jnp.sum(y_true, axis=1)
    loss = jnp.sum(jnp.log1p(sum_neg * sum_pos), axis=1) / num_pos
    return jnp.mean(loss) if reduction == "mean" else loss


if __name__ == "__main__":
    key = jax.random.PRNGKey(0)
    kp, kt, kp2, kt2 = jax.random.split(key, 4)

    # Case 1: small f32 batch (module default reduction='mean' + 'none').
    B, N = 8, 128
    y_pred = jax.random.normal(kp, (B, N), dtype=jnp.float32)
    y_true = (jax.random.uniform(kt, (B, N)) < 0.25).astype(jnp.float32)
    y_true = y_true.at[:, 0].set(1.0)   # ensure num_pos > 0 per row

    loss_mean = sup_contrastive(y_pred, y_true, reduction="mean")
    jax.block_until_ready(loss_mean)
    ref_mean = _reference(y_pred, y_true, "mean")
    assert jnp.allclose(loss_mean, ref_mean, rtol=1e-5, atol=1e-5), (
        f"mean mismatch: {loss_mean} vs {ref_mean}")

    loss_rows = sup_contrastive(y_pred, y_true, reduction="none")
    jax.block_until_ready(loss_rows)
    ref_rows = _reference(y_pred, y_true, "none")
    assert jnp.allclose(loss_rows, ref_rows, rtol=1e-5, atol=1e-5)

    # Case 2: bf16 logits (native dtype into the kernel), batch not a multiple
    # of the tile, multi-tile grid.
    B2, N2 = 20, 128
    y_pred2 = jax.random.normal(kp2, (B2, N2), dtype=jnp.float32).astype(jnp.bfloat16)
    y_true2 = (jax.random.uniform(kt2, (B2, N2)) < 0.25).astype(jnp.float32)
    y_true2 = y_true2.at[:, 0].set(1.0)

    loss2 = sup_contrastive(y_pred2, y_true2, reduction="mean", block_rows=16)
    jax.block_until_ready(loss2)
    ref2 = _reference(y_pred2, y_true2, "mean")
    assert jnp.allclose(loss2, ref2, rtol=1e-5, atol=1e-5), (
        f"bf16 mean mismatch: {loss2} vs {ref2}")

    rows2 = sup_contrastive(y_pred2, y_true2, reduction="none", block_rows=16)
    jax.block_until_ready(rows2)
    assert jnp.allclose(rows2, _reference(y_pred2, y_true2, "none"),
                        rtol=1e-5, atol=1e-5)

    print("KERNEL_OK")
</pallas_src>

<mosaic_0001>
module attributes {stable_mosaic.version = 11 : i64} {
  func.func @_supcon_rows_kernel(%arg0: i32, %arg1: memref<8x128xf32, #tpu.memory_space<vmem>>, %arg2: memref<8x128xf32, #tpu.memory_space<vmem>>, %arg3: memref<8x1xf32, #tpu.memory_space<vmem>>) attributes {dimension_semantics = [#tpu.dimension_semantics<parallel>], iteration_bounds = array<i64: 1>, scalar_prefetch = 0 : i64, scratch_operands = 0 : i64, tpu.core_type = #tpu.core_type<tc>, window_params = [{transform_indices = @transform_0, window_bounds = array<i64: 8, 128>}, {transform_indices = @transform_1, window_bounds = array<i64: 8, 128>}, {transform_indices = @transform_2, window_bounds = array<i64: 8, 1>}]} {
    %c0 = arith.constant 0 : index
    %c0_0 = arith.constant 0 : index
    %0 = vector.load %arg1[%c0, %c0_0] : memref<8x128xf32, #tpu.memory_space<vmem>>, vector<8x128xf32>
    %c0_1 = arith.constant 0 : index
    %c0_2 = arith.constant 0 : index
    %1 = vector.load %arg2[%c0_1, %c0_2] : memref<8x128xf32, #tpu.memory_space<vmem>>, vector<8x128xf32>
    %2 = math.exp %0 : vector<8x128xf32>
    %cst = arith.constant 1.000000e+00 : f32
    %3 = vector.broadcast %cst : f32 to vector<8x128xf32>
    %4 = arith.divf %3, %2 : vector<8x128xf32>
    %cst_3 = arith.constant 1.000000e+00 : f32
    %5 = vector.broadcast %cst_3 : f32 to vector<8x128xf32>
    %6 = arith.subf %5, %1 : vector<8x128xf32>
    %7 = arith.mulf %6, %2 : vector<8x128xf32>
    %cst_4 = arith.constant dense<0.000000e+00> : vector<8xf32>
    %8 = vector.multi_reduction <add>, %7, %cst_4 [1] : vector<8x128xf32> to vector<8xf32>
    %9 = vector.shape_cast %8 : vector<8xf32> to vector<8x1xf32>
    %10 = arith.mulf %1, %4 : vector<8x128xf32>
    %cst_5 = arith.constant dense<0.000000e+00> : vector<8xf32>
    %11 = vector.multi_reduction <add>, %1, %cst_5 [1] : vector<8x128xf32> to vector<8xf32>
    %12 = vector.shape_cast %11 : vector<8xf32> to vector<8x1xf32>
    %13 = vector.broadcast %9 : vector<8x1xf32> to vector<8x128xf32>
    %14 = arith.mulf %13, %10 : vector<8x128xf32>
    %15 = math.log1p %14 : vector<8x128xf32>
    %cst_6 = arith.constant dense<0.000000e+00> : vector<8xf32>
    %16 = vector.multi_reduction <add>, %15, %cst_6 [1] : vector<8x128xf32> to vector<8xf32>
    %17 = vector.shape_cast %16 : vector<8xf32> to vector<8x1xf32>
    %18 = arith.divf %17, %12 : vector<8x1xf32>
    %c0_7 = arith.constant 0 : index
    %c0_8 = arith.constant 0 : index
    %19 = vector.load %arg3[%c0_7, %c0_8] : memref<8x1xf32, #tpu.memory_space<vmem>>, vector<8x1xf32>
    tpu.vector_store %arg3[%c0_7, %c0_8], %18 {strides = array<i32>} : memref<8x1xf32, #tpu.memory_space<vmem>>, vector<8x1xf32>,
    return
  }
  func.func @transform_0(%arg0: i32) -> (i32, i32) {
    %c0_i32 = arith.constant 0 : i32
    %c0_i32_0 = arith.constant 0 : i32
    return %arg0, %c0_i32 : i32, i32
  }
  func.func @transform_1(%arg0: i32) -> (i32, i32) {
    %c0_i32 = arith.constant 0 : i32
    %c0_i32_0 = arith.constant 0 : i32
    return %arg0, %c0_i32 : i32, i32
  }
  func.func @transform_2(%arg0: i32) -> (i32, i32) {
    %c0_i32 = arith.constant 0 : i32
    %c0_i32_0 = arith.constant 0 : i32
    return %arg0, %c0_i32 : i32, i32
  }
}

</mosaic_0001>

<bundles_post_ra>
// kernel: tpu_custom_call.1
= control target key start
LH: loop header
LB: loop body
LE: loop exit
PB: predicated region body
PF: predicated region fallthrough
CT: control target
= control target key end

     0   :  { %7 = vsyncpa [#allocation3], 0  ;;  %s150_s0 = inlined_call_operand.hbm [shape: f32[8,128], index: 0, kind: input, shape index: {}]   ;;  %s151_s1 = inlined_call_operand.hbm [shape: f32[8,128], index: 1, kind: input, shape index: {}]   ;;  %s152_s2 = inlined_call_operand.vmem [shape: f32[8,1], index: 2, kind: output, shape index: {}]  }
   0x1   :  { %8 = vsyncpa [#allocation5], 0  ;;  %s124_s9 = smov [#allocation2]   ;;  %s125_s11 = smov [#allocation4]  }
   0x2   :  { %s15_s10 = sshll.u32 %s124_s9, 4  ;;  %s25_s12 = sshll.u32 %s125_s11, 4  ;;  %s16_s10 = int_to_ptr.vmem [resolvable:$true] %s15_s10  ;;  %s26_s12 = int_to_ptr.vmem [resolvable:$true] %s25_s12 }
   0x3   :  { %s88_s13 = scalar_lea.vmem %s16_s10, 128  ;;  %p93_p1 = scmp.lt.s32.totalorder %s16_s10, %s16_s10 }
   0x4   :  { %p89_p0 = scmp.ne.s32.totalorder %s16_s10, %s88_s13  ;;  %p94_p2 = scmp.lt.s32.totalorder %s88_s13, %s88_s13 }
   0x6   :  { %p95_p3 = por %p94_p2, %p93_p1 }
   0x8   :  { %p96_p4 = pnand %p95_p3, %p89_p0 }
   0xa   :  { %99 = shalt.err (!%p96_p4)
}
   0xb   :  { %18 = dma.hbm_to_vmem [thread:$0]  %s150_s0, 128, %s16_s10, [#allocation3]  }
   0xc   :  { %s108_s16 = scalar_lea.vmem %s26_s12, 128  ;;  %p113_p6 = scmp.lt.s32.totalorder %s26_s12, %s26_s12 }
   0xd   :  { %p109_p5 = scmp.ne.s32.totalorder %s26_s12, %s108_s16  ;;  %p114_p7 = scmp.lt.s32.totalorder %s108_s16, %s108_s16 }
   0xf   :  { %p115_p8 = por %p114_p7, %p113_p6 }
  0x11   :  { %p116_p9 = pnand %p115_p8, %p109_p5 }
  0x13   :  { %119 = shalt.err (!%p116_p9)
}
  0x14   :  { %28 = dma.hbm_to_vmem [thread:$0]  %s151_s1, 128, %s26_s12, [#allocation5]  }
  0x15   :  { %120 = dma.done.wait [#allocation3], 128  }
  0x16   :  { %121 = vsyncadd [#allocation3], 4294967168 }
  0x17   :  { %122 = dma.done.wait [#allocation5], 128  }
  0x18   :  { %123 = vsyncadd [#allocation5], 4294967168  ;;  %v35_v0 = vld [vmem:[#allocation2] sm:$0xff]  ;;  %v36_v2 = vld [vmem:[#allocation4] sm:$0xff]  ;;  %vm62_vm1 = vcmask 7168  }
  0x19   :  { %v37_v1 = vmul.f32 1.442695, %v35_v0  ;;  %v41_v3 = vsub.f32 1.0, %v36_v2 }
  0x1b   :  { %72 = vpow2.f32 %v37_v1 }
  0x28   :  { %v73_v4 = vpop.eup %72 }
  0x29   :  { %v42_v5 = vmul.f32 %v73_v4, %v41_v3  ;;  %74 = vrcp.f32 %v73_v4 }
  0x2b   :  { %43 = vadd.xlane.f32.xlu0 %v42_v5 }
  0x2f   :  { %46 = vadd.xlane.f32.xlu0 %v36_v2 }
  0x36   :  { %v75_v6 = vpop.eup %74 }
  0x37   :  { %v45_v7 = vmul.f32 %v75_v6, %v36_v2 }
  0xb4   :  { %v44_v8 = vpop.xlane.xlu0 %43 }
  0xb5   :  { %v48_v9 = vmul.f32 %v45_v7, %v44_v8 }
  0xb7   :  { %v49_v10 = vadd.f32 1.0, %v48_v9  ;;  %v52_v11 = vmul.f32 -0.5, %v48_v9  ;;  %v55_v13 = vand.u32 2147483647, %v48_v9 }
  0xb8   :  { %v47_v18 = vpop.xlane.xlu0 %46 }
  0xb9   :  { %76 = vlog2.f32 %v49_v10  ;;  %v53_v12 = vadd.f32 1.0, %v52_v11  ;;  %vm56_vm0 = vcmp.lt.f32.partialorder %v55_v13, 0.0004427343 }
  0xba   :  { %78 = vrcp.f32 %v47_v18 }
  0xbb   :  { %v54_v16 = vmul.f32 %v53_v12, %v48_v9 }
  0xc6   :  { %v77_v14 = vpop.eup %76 }
  0xc7   :  { %v51_v15 = vmul.f32 0.6931472, %v77_v14  ;;  %v79_v19 = vpop.eup %78 }
  0xc9   :  { %v57_v17 = vsel %vm56_vm0, %v54_v16, %v51_v15 }
  0xca   :  { %58 = vadd.xlane.f32.xlu1 %v57_v17 }
 0x153   :  { %v59_v20 = vpop.xlane.xlu1 %58 }
 0x154   :  { %v61_v21 = vmul.f32 %v79_v19, %v59_v20 }
 0x156   :  { %63 = vst.msk [vmem:[%s152_s2] sm:$0xff] %vm62_vm1, %v61_v21 }
 0x157   :  { %68 = vsyncpa [#allocation3], 1 }
 0x158   :  { %69 = vsyncpa [#allocation5], 1 }

</bundles_post_ra>
